<compile_context>
chip_gen: v7x
topology: tpu7x:2x2x1
jax: 0.10.0
libtpu: 0.0.40
codegen_flags: <defaults>
</compile_context>

<pallas_src>
import math
import functools

import jax
import jax.numpy as jnp
from jax.experimental import pallas as pl
from jax.experimental.pallas import tpu as pltpu


_TARGET_BLOCK_BYTES = 4 << 20   # ~4 MiB x block; ~2*(in+out)+pe ~ 18 MiB live with double buffering
_MIN_SPLIT_BYTES = 2 << 20      # above this, force >= 2 seq grid steps (megacore / v7x 2 TCs)


def _round_down(v, m):
    return (v // m) * m


def _round_up(v, m):
    return -(-v // m) * m


# ---------------------------------------------------------------------------
# pe buffer construction (matches the PyTorch module __init__ exactly)
# ---------------------------------------------------------------------------
def make_positional_encoding(d_model, max_len=5000, batch_first=False, dtype=jnp.float32):
    position = jnp.arange(0, max_len, dtype=jnp.float32)[:, None]            # (max_len, 1)
    div_term = jnp.exp(jnp.arange(0, d_model, 2, dtype=jnp.float32)
                       * (-math.log(10000.0) / d_model))                     # (ceil(d/2),)
    pe = jnp.zeros((max_len, d_model), dtype=jnp.float32)
    pe = pe.at[:, 0::2].set(jnp.sin(position * div_term))
    pe = pe.at[:, 1::2].set(jnp.cos(position * div_term)[:, : d_model // 2])
    pe = pe[:, None, :]                       # unsqueeze(0).transpose(0,1) -> (max_len, 1, d_model)
    if batch_first:
        pe = jnp.transpose(pe, (1, 0, 2))     # (1, max_len, d_model)
    return pe.astype(dtype)


# ---------------------------------------------------------------------------
# kernels
# ---------------------------------------------------------------------------
def _add_pe_seq_major_kernel(tile_b, d_model, x_ref, pe_ref, o_ref):
    # x_ref/o_ref : (tile_s, tile_b * d_model) lane-dense block.
    # pe_ref      : (tile_s, d_model) squeezed block.
    pe_blk = pe_ref[...]
    if tile_b == 1:
        o_ref[...] = (x_ref[...] + pe_blk).astype(o_ref.dtype)
    elif d_model % 128 == 0:
        # Lane-aligned per-batch chunk adds: reuse the small pe block in-register and
        # avoid materializing a block-sized (tile_s, tile_b*D) tiled-pe temp.
        if tile_b <= 16:
            for b in range(tile_b):
                sl = pl.ds(b * d_model, d_model)
                o_ref[:, sl] = (x_ref[:, sl] + pe_blk).astype(o_ref.dtype)
        else:
            def body(b, carry):
                off = pl.multiple_of(b * d_model, 128)
                sl = pl.ds(off, d_model)
                o_ref[:, sl] = (x_ref[:, sl] + pe_blk).astype(o_ref.dtype)
                return carry
            jax.lax.fori_loop(0, tile_b, body, 0)
    else:
        # Unaligned D: a single tiled add beats many unaligned lane slices (hidden under DMA).
        o_ref[...] = (x_ref[...] + jnp.tile(pe_blk, (1, tile_b))).astype(o_ref.dtype)


def _add_pe_broadcast_kernel(x_ref, pe_ref, o_ref):
    # batch_first paths: pe broadcasts over the leading (batch) axis.  Pure VPU work.
    o_ref[...] = (x_ref[...] + pe_ref[...]).astype(o_ref.dtype)


# ---------------------------------------------------------------------------
# tiling helpers
# ---------------------------------------------------------------------------
def _pick_seq_tile(seq_len, unit, rows_target, total_bytes):
    """Seq tile: multiple of `unit` (or the full dim), close to rows_target rows."""
    if seq_len <= unit:
        return seq_len
    tile = max(unit, _round_down(min(rows_target, seq_len), unit))
    if tile >= seq_len and total_bytes >= _MIN_SPLIT_BYTES and seq_len >= 2 * unit:
        # Force >= 2 grid steps so both TensorCores (v7x) / megacore get work.
        tile = min(_round_up(_round_up(seq_len, 2) // 2, unit),
                   _round_down(seq_len, unit))
        tile = max(tile, unit)
    return tile


# ---------------------------------------------------------------------------
# forward
# ---------------------------------------------------------------------------
@functools.partial(jax.jit, static_argnames=("batch_first",))
def positional_encoding_forward(x, pe, batch_first=False):
    itemsize = jnp.dtype(x.dtype).itemsize
    pe = pe.astype(x.dtype)                     # avoid f32 pe DMA / in-kernel promote for bf16 x
    sub = 8 * max(1, 4 // itemsize)             # sublane packing: 8 f32 / 16 bf16 / 32 int8
    total_bytes = x.size * itemsize

    if batch_first:
        B, S, D = x.shape
        pe = pe[:, :, :D]                       # match torch pe[:, :seq, :d] slicing
        max_len = pe.shape[1]

        if D % 128 == 0:
            # 3-D layout: block (tile_b, tile_s, D). tile_s -> sublanes (dense),
            # D -> lanes (dense); pe broadcasts over the outer batch axis for free.
            if B * D * itemsize * sub <= _TARGET_BLOCK_BYTES:
                tile_b = B
            else:
                tile_b = max(1, min(B, _TARGET_BLOCK_BYTES // (D * itemsize * sub)))
            rows_target = max(1, _TARGET_BLOCK_BYTES // (tile_b * D * itemsize))
            tile_s = _pick_seq_tile(S, sub, rows_target, total_bytes)

            pe_in = pe
            if tile_s == S and S % 8 != 0 and S != max_len:
                pe_in = pe[:, :S, :]            # tiny slice so block dims == full dims

            grid = (pl.cdiv(S, tile_s), pl.cdiv(B, tile_b))
            kernel = _add_pe_broadcast_kernel
            in_specs = [
                pl.BlockSpec((tile_b, tile_s, D), lambda i, j: (j, i, 0)),
                pl.BlockSpec((1, tile_s, D), lambda i, j: (0, i, 0)),
            ]
            out_spec = pl.BlockSpec((tile_b, tile_s, D), lambda i, j: (j, i, 0))
            out_shape = jax.ShapeDtypeStruct((B, S, D), x.dtype)
            x_in = x
            x_blk_elems = tile_b * tile_s * D
            pe_blk_elems = tile_s * D
        else:
            # Flattened lane-dense layout: (B, S*D); lane axis = seq*d.
            x_in = x.reshape(B, S * D)          # free contiguous reshape
            pe_in = pe.reshape(1, max_len * D)
            s_unit = 128 // math.gcd(128, D)    # tile_s*D must be a multiple of 128 lanes
            if B <= 8 or B * D * itemsize * s_unit <= _TARGET_BLOCK_BYTES:
                tile_b = B
            else:
                tile_b = max(8, _round_down(_TARGET_BLOCK_BYTES // (D * itemsize * s_unit), 8))
                tile_b = min(tile_b, _round_down(B, 8))
            rows_target = max(1, _TARGET_BLOCK_BYTES // (tile_b * D * itemsize))
            tile_s = _pick_seq_tile(S, s_unit, rows_target, total_bytes)

            if tile_s == S and (S * D) % 128 != 0:
                pe_in = pe_in[:, : S * D]       # tiny slice so block lanes == full lanes

            grid = (pl.cdiv(S, tile_s), pl.cdiv(B, tile_b))
            kernel = _add_pe_broadcast_kernel
            in_specs = [
                pl.BlockSpec((tile_b, tile_s * D), lambda i, j: (j, i)),
                pl.BlockSpec((1, tile_s * D), lambda i, j: (0, i)),
            ]
            out_spec = pl.BlockSpec((tile_b, tile_s * D), lambda i, j: (j, i))
            out_shape = jax.ShapeDtypeStruct((B, S * D), x.dtype)
            x_blk_elems = tile_b * tile_s * D
            pe_blk_elems = tile_s * D
    else:
        S, B, D = x.shape
        max_len = pe.shape[0]
        x_in = x.reshape(S, B * D)              # lane-dense, free contiguous reshape
        pe_in = pe.reshape(max_len, D)          # squeeze the size-1 batch axis

        b_unit = 128 // math.gcd(128, D)        # tile_b*D must be a multiple of 128 lanes
        if B <= b_unit or B * D * itemsize * sub <= _TARGET_BLOCK_BYTES:
            tile_b = B
        else:
            tile_b = max(b_unit,
                         _round_down(_TARGET_BLOCK_BYTES // (D * itemsize * sub), b_unit))
            tile_b = min(tile_b, _round_down(B, b_unit))
        rows_target = max(1, _TARGET_BLOCK_BYTES // (tile_b * D * itemsize))
        tile_s = _pick_seq_tile(S, sub, rows_target, total_bytes)

        if tile_s == S and S % 8 != 0 and S != max_len:
            pe_in = pe_in[:S]                   # tiny slice so block rows == full rows

        grid = (pl.cdiv(S, tile_s), pl.cdiv(B, tile_b))
        kernel = functools.partial(_add_pe_seq_major_kernel, tile_b, D)
        in_specs = [
            pl.BlockSpec((tile_s, tile_b * D), lambda i, j: (i, j)),
            pl.BlockSpec((tile_s, D), lambda i, j: (i, 0)),
        ]
        out_spec = pl.BlockSpec((tile_s, tile_b * D), lambda i, j: (i, j))
        out_shape = jax.ShapeDtypeStruct((S, B * D), x.dtype)
        x_blk_elems = tile_s * tile_b * D
        pe_blk_elems = tile_s * D

    # VMEM budget derived from the actual blocks: (x in + out + pe), double buffered, + slack.
    blk_bytes = (2 * x_blk_elems + pe_blk_elems) * itemsize
    vmem_limit = int(min(max(2 * blk_bytes + (4 << 20), 32 << 20), 48 << 20))

    out = pl.pallas_call(
        kernel,
        grid=grid,
        in_specs=in_specs,
        out_specs=out_spec,
        out_shape=out_shape,
        compiler_params=pltpu.CompilerParams(
            dimension_semantics=("parallel", "parallel"),
            vmem_limit_bytes=vmem_limit,
        ),
    )(x_in, pe_in)
    return out.reshape(x.shape)


if __name__ == "__main__":
    d_model = 32
    max_len = 64
    seq = 8
    batch = 2

    # --- batch_first=False (default): x is (seq, batch, d_model), D % 128 != 0 path ---
    pe = make_positional_encoding(d_model, max_len=max_len, batch_first=False)
    x = jax.random.normal(jax.random.PRNGKey(0), (seq, batch, d_model), dtype=jnp.float32)
    out = jax.block_until_ready(positional_encoding_forward(x, pe, batch_first=False))
    ref = x + pe[:seq, :, :]
    assert out.shape == x.shape
    assert jnp.allclose(out, ref, atol=1e-6), "mismatch (batch_first=False, D=32)"

    # --- batch_first=True: x is (batch, seq, d_model), flattened lane-dense path ---
    pe_bf = make_positional_encoding(d_model, max_len=max_len, batch_first=True)
    x_bf = jax.random.normal(jax.random.PRNGKey(1), (batch, seq, d_model), dtype=jnp.float32)
    out_bf = jax.block_until_ready(positional_encoding_forward(x_bf, pe_bf, batch_first=True))
    ref_bf = x_bf + pe_bf[:, :seq, :d_model]
    assert out_bf.shape == x_bf.shape
    assert jnp.allclose(out_bf, ref_bf, atol=1e-6), "mismatch (batch_first=True, D=32)"

    # --- D % 128 == 0 paths (chunked seq-major adds / 3-D broadcast), non-divisible seq ---
    d2, s2, b2 = 128, 20, 3
    pe2 = make_positional_encoding(d2, max_len=max_len, batch_first=False)
    x2 = jax.random.normal(jax.random.PRNGKey(2), (s2, b2, d2), dtype=jnp.float32)
    out2 = jax.block_until_ready(positional_encoding_forward(x2, pe2, batch_first=False))
    assert jnp.allclose(out2, x2 + pe2[:s2, :, :], atol=1e-6), "mismatch (batch_first=False, D=128)"

    pe3 = make_positional_encoding(d2, max_len=max_len, batch_first=True)
    x3 = jax.random.normal(jax.random.PRNGKey(3), (b2, s2, d2), dtype=jnp.float32)
    out3 = jax.block_until_ready(positional_encoding_forward(x3, pe3, batch_first=True))
    assert jnp.allclose(out3, x3 + pe3[:, :s2, :d2], atol=1e-6), "mismatch (batch_first=True, D=128)"

    print("KERNEL_OK")
</pallas_src>

<mosaic_0001>
module attributes {stable_mosaic.version = 11 : i64} {
  func.func @_add_pe_seq_major_kernel(%arg0: i32, %arg1: i32, %arg2: memref<8x64xf32, #tpu.memory_space<vmem>>, %arg3: memref<8x32xf32, #tpu.memory_space<vmem>>, %arg4: memref<8x64xf32, #tpu.memory_space<vmem>>) attributes {dimension_semantics = [#tpu.dimension_semantics<parallel>, #tpu.dimension_semantics<parallel>], iteration_bounds = array<i64: 1, 1>, scalar_prefetch = 0 : i64, scratch_operands = 0 : i64, tpu.core_type = #tpu.core_type<tc>, window_params = [{transform_indices = @transform_0, window_bounds = array<i64: 8, 64>}, {transform_indices = @transform_1, window_bounds = array<i64: 8, 32>}, {transform_indices = @transform_2, window_bounds = array<i64: 8, 64>}]} {
    %c0 = arith.constant 0 : index
    %c0_0 = arith.constant 0 : index
    %0 = vector.load %arg3[%c0, %c0_0] : memref<8x32xf32, #tpu.memory_space<vmem>>, vector<8x32xf32>
    %c0_1 = arith.constant 0 : index
    %c0_2 = arith.constant 0 : index
    %1 = vector.load %arg2[%c0_1, %c0_2] : memref<8x64xf32, #tpu.memory_space<vmem>>, vector<8x64xf32>
    %2 = tpu.concatenate %0, %0 in 1 : vector<8x32xf32>, vector<8x32xf32> -> vector<8x64xf32>
    %3 = arith.addf %1, %2 : vector<8x64xf32>
    %c0_3 = arith.constant 0 : index
    %c0_4 = arith.constant 0 : index
    %4 = vector.load %arg4[%c0_3, %c0_4] : memref<8x64xf32, #tpu.memory_space<vmem>>, vector<8x64xf32>
    tpu.vector_store %arg4[%c0_3, %c0_4], %3 {strides = array<i32>} : memref<8x64xf32, #tpu.memory_space<vmem>>, vector<8x64xf32>,
    return
  }
  func.func @transform_0(%arg0: i32, %arg1: i32) -> (i32, i32) {
    %c0_i32 = arith.constant 0 : i32
    return %arg0, %arg1 : i32, i32
  }
  func.func @transform_1(%arg0: i32, %arg1: i32) -> (i32, i32) {
    %c0_i32 = arith.constant 0 : i32
    %c0_i32_0 = arith.constant 0 : i32
    return %arg0, %c0_i32 : i32, i32
  }
  func.func @transform_2(%arg0: i32, %arg1: i32) -> (i32, i32) {
    %c0_i32 = arith.constant 0 : i32
    return %arg0, %arg1 : i32, i32
  }
}

</mosaic_0001>

<bundles_post_ra>
// kernel: positional_encoding_forward.1
= control target key start
LH: loop header
LB: loop body
LE: loop exit
PB: predicated region body
PF: predicated region fallthrough
CT: control target
= control target key end

     0   :  { %s27_s11 = smov 32   ;;  %vm17_vm0 = vcmask 261120   ;;  %vm20_vm1 = vcmask 523264   ;;  %s52_s1 = inlined_call_operand.vmem [shape: f32[64,32], index: 1, kind: input, shape index: {}]   ;;  %s53_s0 = inlined_call_operand.vmem [shape: f32[8,64], index: 0, kind: input, shape index: {}]   ;;  %s54_s2 = inlined_call_operand.vmem [shape: f32[8,64], index: 2, kind: output, shape index: {}]  }
   0x1   :  { %v11_v0 = vld [vmem:[%s52_s1] sm:$0xff] }
   0x2   :  { %14 = vrot.lane.b32.xlu0 %v11_v0, %s27_s11  ;;  %v12_v1 = vld [vmem:[%s53_s0] sm:$0xff] }
  0x74   :  { %v15_v2 = vpop.permute.xlu0 %14 }
  0x75   :  { %v18_v3 = vsel %vm17_vm0, %v11_v0, %v15_v2 }
  0x76   :  { %v19_v4 = vadd.f32 %v18_v3, %v12_v1 }
  0x78   :  { %21 = vst.msk [vmem:[%s54_s2] sm:$0xff] %vm20_vm1, %v19_v4 }

</bundles_post_ra>
